<compile_context>
chip_gen: v6e
topology: v6e:2x2x1
jax: 0.10.0
libtpu: 0.0.40
codegen_flags: <defaults>
</compile_context>

<pallas_src>
import functools

import jax
import jax.numpy as jnp
from jax.experimental import pallas as pl
from jax.experimental.pallas import tpu as pltpu

EPS = 1e-5          # PyTorch InstanceNorm2d default eps
NEG_SLOPE = 0.01    # F.leaky_relu default negative_slope


def adain_kernel(x_ref, st_ref, o_ref, *, inv_hw):
    # x_ref / o_ref: (TC, HW) native dtype; st_ref: (TC, 2) f32 = [scale, shift]
    x = x_ref[...].astype(jnp.float32)                       # widen in-vreg for stats
    mean = jnp.sum(x, axis=1, keepdims=True) * inv_hw        # (TC, 1)
    sumsq = jnp.sum(x * x, axis=1, keepdims=True) * inv_hw   # (TC, 1)
    var = jnp.maximum(sumsq - mean * mean, 0.0)              # biased var, clamp >= 0
    inv = jax.lax.rsqrt(var + EPS)                           # EUP slot

    s = st_ref[:, 0:1]                                       # (TC, 1)
    t = st_ref[:, 1:2]                                       # (TC, 1)
    a = s * inv
    b = t - a * mean
    # Re-read x for the affine so the f32 copy above need not stay live.
    # Single fused per-element affine: 1 mul + 1 add per element.
    o_ref[...] = (a * x_ref[...].astype(jnp.float32) + b).astype(o_ref.dtype)


def _sublane_align(dtype):
    # Sub-32-bit dtypes pack along sublanes: 8 rows for f32, 16 for bf16, 32 for i8/fp8.
    itemsize = jnp.dtype(dtype).itemsize
    return max(8, 32 // itemsize)


def _choose_row_tile(R, HW, dtype):
    """Pick the row tile TC (over flattened B*C) and a VMEM limit, generation-aware."""
    itemsize = jnp.dtype(dtype).itemsize
    align = _sublane_align(dtype)

    try:
        vmem = int(pltpu.get_tpu_info().vmem_capacity_bytes)
    except Exception:
        vmem = 64 * 1024 * 1024                  # be conservative (v7x-sized)

    if vmem >= 100 * 1024 * 1024:                # v5e / v6e: 128 MiB physical VMEM
        budget = 64 * 1024 * 1024
        vmem_limit = 100 * 1024 * 1024
    else:                                        # v7x: 64 MiB physical VMEM
        budget = 40 * 1024 * 1024
        vmem_limit = 48 * 1024 * 1024

    # Bytes per row: double-buffered in + out native tiles plus ~3 f32 temps
    # from the in-kernel widening.
    per_row = HW * (4 * itemsize + 12)
    max_tc = max(1, budget // per_row)
    max_tc = min(max_tc, R)

    if R <= max_tc:
        # Whole problem fits in one tile.  Split into two grid steps (one per
        # v7x TensorCore) when alignment allows and each half is still >= 1 MiB.
        half = R // 2
        if R % 2 == 0 and half % align == 0 and half * HW * itemsize >= (1 << 20):
            return half, R, vmem_limit
        return R, R, vmem_limit

    # Prefer the largest sublane-aligned divisor of R: no row padding, no copies.
    best = 0
    tc = align
    while tc <= max_tc:
        if R % tc == 0:
            best = tc
        tc += align
    if best:
        return best, R, vmem_limit

    # Fallback: pad the row axis (rare; costs one extra pass over x).
    # TODO(synk): if even `align` rows exceed the budget (huge HW) an inner
    # spatial two-pass pipeline would be required; not implemented.
    tc = max(align, (max_tc // align) * align)
    r_pad = ((R + tc - 1) // tc) * tc
    return tc, r_pad, vmem_limit


def adain_forward(x, embedding, w_scale, b_scale, w_shift, b_shift):
    B, C, H, W = x.shape
    HW = H * W
    R = B * C
    dtype = x.dtype

    # ---- Hoisted scale/shift: one batched matmul + leaky_relu (XLA side) ----
    w = jnp.concatenate([w_scale, w_shift], axis=0).astype(jnp.float32)   # (2C, E)
    bb = jnp.concatenate([b_scale, b_shift], axis=0).astype(jnp.float32)  # (2C,)
    st = jnp.dot(embedding.astype(jnp.float32), w.T,
                 precision=jax.lax.Precision.HIGHEST) + bb                # (B, 2C)
    st = jnp.where(st >= 0, st, NEG_SLOPE * st)
    s, t = st[:, :C], st[:, C:]
    # Pack per-(b, c) scale/shift into one (R, 2) array: one tiny DMA per step.
    st2 = jnp.stack([s.reshape(R), t.reshape(R)], axis=-1)                # (R, 2) f32

    # ---- Layout: rows = flattened (B, C); last dim = FULL unpadded HW ----
    x2 = x.reshape(R, HW)                        # contiguous reshape, no copy
    TC, R_pad, vmem_limit = _choose_row_tile(R, HW, dtype)
    if R_pad != R:                               # rare fallback path only
        x2 = jnp.pad(x2, ((0, R_pad - R), (0, 0)))
        st2 = jnp.pad(st2, ((0, R_pad - R), (0, 0)))

    out = pl.pallas_call(
        functools.partial(adain_kernel, inv_hw=1.0 / HW),
        out_shape=jax.ShapeDtypeStruct((R_pad, HW), dtype),
        grid_spec=pltpu.PrefetchScalarGridSpec(
            num_scalar_prefetch=0,
            grid=(R_pad // TC,),
            in_specs=[
                pl.BlockSpec((TC, HW), lambda r: (r, 0)),   # x rows
                pl.BlockSpec((TC, 2), lambda r: (r, 0)),    # packed [scale, shift]
            ],
            out_specs=pl.BlockSpec((TC, HW), lambda r: (r, 0)),
        ),
        compiler_params=pltpu.CompilerParams(
            dimension_semantics=("parallel",),
            vmem_limit_bytes=vmem_limit,
        ),
    )(x2, st2)

    if R_pad != R:
        out = out[:R]
    return out.reshape(B, C, H, W)


def adain_reference(x, emb, ws, bs, wh, bh):
    """Plain-JAX reference matching the PyTorch forward."""
    s = jnp.dot(emb, ws.T, precision=jax.lax.Precision.HIGHEST) + bs
    t = jnp.dot(emb, wh.T, precision=jax.lax.Precision.HIGHEST) + bh
    s = jnp.where(s >= 0, s, NEG_SLOPE * s)
    t = jnp.where(t >= 0, t, NEG_SLOPE * t)
    mean = x.mean(axis=(2, 3), keepdims=True)
    var = jnp.mean((x - mean) ** 2, axis=(2, 3), keepdims=True)  # biased variance
    xn = (x - mean) / jnp.sqrt(var + EPS)
    return s[:, :, None, None] * xn + t[:, :, None, None]


def kaiming_uniform(key, shape, a=0.01):
    # nn.init.kaiming_uniform_(weight, a): fan_in = in_features (last dim of (out, in))
    fan_in = shape[1]
    gain = (2.0 / (1.0 + a * a)) ** 0.5
    bound = gain * (3.0 / fan_in) ** 0.5
    return jax.random.uniform(key, shape, jnp.float32, -bound, bound)


if __name__ == "__main__":
    B, C, H, W = 2, 4, 16, 16   # num_features = C
    E = 8                       # embedding_dim

    key = jax.random.PRNGKey(0)
    k_x, k_e, k_ws, k_wh = jax.random.split(key, 4)

    x = jax.random.normal(k_x, (B, C, H, W), jnp.float32)
    embedding = jax.random.normal(k_e, (B, E), jnp.float32)

    # Deterministic parameter init matching the module __init__ shapes / scheme.
    w_scale = kaiming_uniform(k_ws, (C, E), a=0.01)
    w_shift = kaiming_uniform(k_wh, (C, E), a=0.01)
    b_scale = jnp.zeros((C,), jnp.float32)
    b_shift = jnp.zeros((C,), jnp.float32)

    out = adain_forward(x, embedding, w_scale, b_scale, w_shift, b_shift)
    out = jax.block_until_ready(out)

    ref = adain_reference(x, embedding, w_scale, b_scale, w_shift, b_shift)
    assert out.shape == (B, C, H, W)
    assert jnp.allclose(out, ref, atol=1e-4, rtol=1e-4), "mismatch vs reference"

    print("KERNEL_OK")
</pallas_src>

<mosaic_0001>
module attributes {stable_mosaic.version = 11 : i64} {
  func.func @adain_kernel(%arg0: i32, %arg1: memref<8x256xf32, #tpu.memory_space<vmem>>, %arg2: memref<8x2xf32, #tpu.memory_space<vmem>>, %arg3: memref<8x256xf32, #tpu.memory_space<vmem>>) attributes {dimension_semantics = [#tpu.dimension_semantics<parallel>], iteration_bounds = array<i64: 1>, scalar_prefetch = 0 : i64, scratch_operands = 0 : i64, tpu.core_type = #tpu.core_type<tc>, window_params = [{transform_indices = @transform_0, window_bounds = array<i64: 8, 256>}, {transform_indices = @transform_1, window_bounds = array<i64: 8, 2>}, {transform_indices = @transform_2, window_bounds = array<i64: 8, 256>}]} {
    %c0 = arith.constant 0 : index
    %c0_0 = arith.constant 0 : index
    %0 = vector.load %arg1[%c0, %c0_0] : memref<8x256xf32, #tpu.memory_space<vmem>>, vector<8x256xf32>
    %cst = arith.constant dense<0.000000e+00> : vector<8xf32>
    %1 = vector.multi_reduction <add>, %0, %cst [1] : vector<8x256xf32> to vector<8xf32>
    %2 = vector.shape_cast %1 : vector<8xf32> to vector<8x1xf32>
    %cst_1 = arith.constant 3.906250e-03 : f32
    %3 = vector.broadcast %cst_1 : f32 to vector<8x1xf32>
    %4 = arith.mulf %2, %3 : vector<8x1xf32>
    %5 = arith.mulf %0, %0 : vector<8x256xf32>
    %cst_2 = arith.constant dense<0.000000e+00> : vector<8xf32>
    %6 = vector.multi_reduction <add>, %5, %cst_2 [1] : vector<8x256xf32> to vector<8xf32>
    %7 = vector.shape_cast %6 : vector<8xf32> to vector<8x1xf32>
    %cst_3 = arith.constant 3.906250e-03 : f32
    %8 = vector.broadcast %cst_3 : f32 to vector<8x1xf32>
    %9 = arith.mulf %7, %8 : vector<8x1xf32>
    %10 = arith.mulf %4, %4 : vector<8x1xf32>
    %11 = arith.subf %9, %10 : vector<8x1xf32>
    %cst_4 = arith.constant 0.000000e+00 : f32
    %12 = vector.broadcast %cst_4 : f32 to vector<8x1xf32>
    %13 = arith.maximumf %11, %12 : vector<8x1xf32>
    %cst_5 = arith.constant 9.99999974E-6 : f32
    %14 = vector.broadcast %cst_5 : f32 to vector<8x1xf32>
    %15 = arith.addf %13, %14 : vector<8x1xf32>
    %16 = math.rsqrt %15 : vector<8x1xf32>
    %c0_6 = arith.constant 0 : index
    %c0_7 = arith.constant 0 : index
    %17 = vector.load %arg2[%c0_6, %c0_7] : memref<8x2xf32, #tpu.memory_space<vmem>>, vector<8x1xf32>
    %c0_8 = arith.constant 0 : index
    %c1 = arith.constant 1 : index
    %18 = vector.load %arg2[%c0_8, %c1] : memref<8x2xf32, #tpu.memory_space<vmem>>, vector<8x1xf32>
    %19 = arith.mulf %17, %16 : vector<8x1xf32>
    %20 = arith.mulf %19, %4 : vector<8x1xf32>
    %21 = arith.subf %18, %20 : vector<8x1xf32>
    %c0_9 = arith.constant 0 : index
    %c0_10 = arith.constant 0 : index
    %22 = vector.load %arg1[%c0_9, %c0_10] : memref<8x256xf32, #tpu.memory_space<vmem>>, vector<8x256xf32>
    %23 = vector.broadcast %19 : vector<8x1xf32> to vector<8x256xf32>
    %24 = arith.mulf %23, %22 : vector<8x256xf32>
    %25 = vector.broadcast %21 : vector<8x1xf32> to vector<8x256xf32>
    %26 = arith.addf %24, %25 : vector<8x256xf32>
    %c0_11 = arith.constant 0 : index
    %c0_12 = arith.constant 0 : index
    %27 = vector.load %arg3[%c0_11, %c0_12] : memref<8x256xf32, #tpu.memory_space<vmem>>, vector<8x256xf32>
    tpu.vector_store %arg3[%c0_11, %c0_12], %26 {strides = array<i32>} : memref<8x256xf32, #tpu.memory_space<vmem>>, vector<8x256xf32>,
    return
  }
  func.func @transform_0(%arg0: i32) -> (i32, i32) {
    %c0_i32 = arith.constant 0 : i32
    %c0_i32_0 = arith.constant 0 : i32
    return %arg0, %c0_i32 : i32, i32
  }
  func.func @transform_1(%arg0: i32) -> (i32, i32) {
    %c0_i32 = arith.constant 0 : i32
    %c0_i32_0 = arith.constant 0 : i32
    return %arg0, %c0_i32 : i32, i32
  }
  func.func @transform_2(%arg0: i32) -> (i32, i32) {
    %c0_i32 = arith.constant 0 : i32
    %c0_i32_0 = arith.constant 0 : i32
    return %arg0, %c0_i32 : i32, i32
  }
}

</mosaic_0001>

<bundles_post_ra>
// kernel: tpu_custom_call.1
= control target key start
LH: loop header
LB: loop body
LE: loop exit
PB: predicated region body
PF: predicated region fallthrough
CT: control target
= control target key end

     0   :  { %7 = vsyncpa [#allocation3], 0  ;;  %s162_s0 = inlined_call_operand.hbm [shape: f32[8,256], index: 0, kind: input, shape index: {}]   ;;  %s163_s1 = inlined_call_operand.vmem [shape: f32[8,2], index: 1, kind: input, shape index: {}]   ;;  %s164_s2 = inlined_call_operand.hbm [shape: f32[8,256], index: 2, kind: output, shape index: {}]  }
   0x1   :  { %8 = vsyncpa [#allocation4], 0  ;;  %s133_s9 = smov [#allocation2]  }
   0x2   :  { %s15_s10 = sshll.u32 %s133_s9, 4  ;;  %s16_s10 = int_to_ptr.vmem [resolvable:$true] %s15_s10 }
   0x3   :  { %s97_s11 = scalar_lea.vmem %s16_s10, 256  ;;  %p102_p1 = scmp.lt.s32.totalorder %s16_s10, %s16_s10 }
   0x4   :  { %p98_p0 = scmp.ne.s32.totalorder %s16_s10, %s97_s11  ;;  %p103_p2 = scmp.lt.s32.totalorder %s97_s11, %s97_s11 }
   0x6   :  { %p104_p3 = por %p103_p2, %p102_p1 }
   0x8   :  { %p105_p4 = pnand %p104_p3, %p98_p0 }
   0xa   :  { %108 = shalt.err (!%p105_p4)
}
   0xb   :  { %18 = dma.hbm_to_vmem [thread:$0]  %s162_s0, 256, %s16_s10, [#allocation3]  }
   0xc   :  { %129 = dma.done.wait [#allocation3], 256  }
   0xd   :  { %130 = vsyncadd [#allocation3], 4294967040  ;;  %v24_v0 = vld [vmem:[#allocation2] sm:$0xff]  ;;  %v25_v1 = vld [vmem:[#allocation2 + $0x8] sm:$0xff]  ;;  %v134_v6 = vmov 0   ;;  %v135_v15 = vmov 1  }
   0xe   :  { %v26_v2 = vadd.f32 %v25_v1, %v24_v0  ;;  %v30_v3 = vmul.f32 %v24_v0, %v24_v0  ;;  %v31_v4 = vmul.f32 %v25_v1, %v25_v1  ;;  %85 = vset.pattern.permute.xlu1 %v134_v6  ;;  %86 = vset.pattern.permute.xlu0 %v135_v15  ;;  %v41_v16 = vld [vmem:[%s163_s1] sm:$0xff]  ;;  %s136_s15 = smov 1   ;;  %s137_s16 = smov [#allocation5]  }
   0xf   :  { %s71_s17 = sshll.u32 %s137_s16, 4  ;;  %s72_s17 = int_to_ptr.vmem [resolvable:$true] %s71_s17 }
  0x10   :  { %27 = vadd.xlane.f32.xlu0 %v26_v2  ;;  %v32_v5 = vadd.f32 %v31_v4, %v30_v3  ;;  %s109_s1 = scalar_lea.vmem %s72_s17, 256  ;;  %p114_p6 = scmp.lt.s32.totalorder %s72_s17, %s72_s17 }
  0x11   :  { %p110_p5 = scmp.ne.s32.totalorder %s72_s17, %s109_s1  ;;  %p115_p7 = scmp.lt.s32.totalorder %s109_s1, %s109_s1 }
  0x13   :  { %p116_p8 = por %p115_p7, %p114_p6 }
  0x14   :  { %33 = vadd.xlane.f32.xlu0 %v32_v5 }
  0x15   :  { %p117_p9 = pnand %p116_p8, %p110_p5 }
  0x99   :  { %v28_v7 = vpop.xlane.xlu0 %27 }
  0x9a   :  { %v29_v8 = vmul.f32 0.00390625, %v28_v7 }
  0x9c   :  { %v36_v10 = vmul.f32 %v29_v8, %v29_v8 }
  0x9d   :  { %v34_v9 = vpop.xlane.xlu0 %33 }
  0x9e   :  { %v35_v11 = vmul.f32 0.00390625, %v34_v9 }
  0xa0   :  { %v37_v12 = vsub.f32 %v35_v11, %v36_v10 }
  0xa2   :  { %v38_v13 = vmax.f32 %v37_v12, 0.0 }
  0xa4   :  { %v39_v14 = vadd.f32 1e-05, %v38_v13 }
  0xa6   :  { %87 = vrsqrt.f32 %v39_v14 }
  0xb3   :  { %v88_v17 = vpop.eup %87 }
  0xb4   :  { %v42_v18 = vmul.f32 %v88_v17, %v41_v16 }
  0xb6   :  { %v43_v19 = vmul.f32 %v42_v18, %v29_v8 }
  0xb8   :  { %45 = vrot.lane.b32.xlu1 %v43_v19, %s136_s15 }
  0xbc   :  { %51 = vperm.xlu1 %85, %v42_v18  }
 0x12a   :  { %v46_v20 = vpop.permute.xlu1 %45 }
 0x12b   :  { %v48_v21 = vsub.f32 %v41_v16, %v46_v20 }
 0x12d   :  { %58 = vperm.xlu0 %86, %v48_v21  }
 0x137   :  { %v52_v22 = vpop.permute.xlu1 %51 }
 0x138   :  { %v54_v23 = vmul.f32 %v52_v22, %v24_v0  ;;  %v55_v24 = vmul.f32 %v52_v22, %v25_v1 }
 0x1a8   :  { %v59_v25 = vpop.permute.xlu0 %58 }
 0x1a9   :  { %v61_v26 = vadd.f32 %v59_v25, %v54_v23  ;;  %v62_v27 = vadd.f32 %v59_v25, %v55_v24 }
 0x1ab   :  { %63 = vst [vmem:[#allocation5] sm:$0xff] %v61_v26  ;;  %64 = vst [vmem:[#allocation5 + $0x8] sm:$0xff] %v62_v27 }
 0x1ac   :  { %120 = shalt.err (!%p117_p9)
}
 0x1ad   :  { %74 = dma.vmem_to_hbm [thread:$0]  %s72_s17, 256, %s164_s2, [#allocation4]  }
 0x1ae   :  { %131 = dma.done.wait [#allocation4], 256  }
 0x1af   :  { %132 = vsyncadd [#allocation4], 4294967040 }
 0x1b0   :  { %78 = vsyncpa [#allocation3], 1 }
 0x1b1   :  { %79 = vsyncpa [#allocation4], 1 }

</bundles_post_ra>
